<compile_context>
chip_gen: v5e
topology: v5e:2x2
jax: 0.10.0
libtpu: 0.0.40
codegen_flags: <defaults>
</compile_context>

<pallas_src>
import functools
import math

import jax
import jax.numpy as jnp
from jax.experimental import pallas as pl
from jax.experimental.pallas import tpu as pltpu


def _round_up(x, m):
    return (x + m - 1) // m * m


_DEFAULT_VMEM_BUDGET = 24 * 1024 * 1024   # leave headroom under the 32 MiB scoped limit
_VMEM_LIMIT_BYTES = 32 * 1024 * 1024      # > v5e 16 MiB default, < v7x 64 MiB physical


# ----------------------------------------------------------------------------
# Kernel bodies
# ----------------------------------------------------------------------------
def _epilogue(acc_f32, bias_row, out_ref, *, scale, negative_slope, gain):
    y = acc_f32 * scale + bias_row                       # equalized-lr scale + bias fused
    if negative_slope is not None:                       # optional fused LeakyReLU
        y = jnp.where(y >= 0.0, y, y * negative_slope) * gain
    out_ref[...] = y.astype(out_ref.dtype)


def _matmul_kernel_single_k(lhs_ref, rhs_ref, bias_ref, out_ref, *,
                            scale, negative_slope, gain):
    # Single K tile: no accumulator scratch, no pl.when init/finalize.
    acc = jnp.dot(lhs_ref[...], rhs_ref[...], preferred_element_type=jnp.float32)
    _epilogue(acc, bias_ref[...], out_ref,
              scale=scale, negative_slope=negative_slope, gain=gain)


def _matmul_kernel_multi_k(lhs_ref, rhs_ref, bias_ref, out_ref, acc_ref, *,
                           scale, negative_slope, gain):
    @pl.when(pl.program_id(2) == 0)
    def _():
        acc_ref[...] = jnp.zeros_like(acc_ref)

    acc_ref[...] += jnp.dot(lhs_ref[...], rhs_ref[...],
                            preferred_element_type=jnp.float32)

    @pl.when(pl.program_id(2) == pl.num_programs(2) - 1)
    def _():
        _epilogue(acc_ref[...], bias_ref[...], out_ref,
                  scale=scale, negative_slope=negative_slope, gain=gain)


# ----------------------------------------------------------------------------
# Tiled matmul wrapper:  out = leaky_relu?((lhs @ rhs) * scale + bias)
# ----------------------------------------------------------------------------
def _pallas_scaled_matmul(lhs, rhs, bias, *, scale, negative_slope=None, gain=1.0,
                          out_dtype=jnp.float32, compute_dtype=jnp.bfloat16,
                          vmem_budget_bytes=_DEFAULT_VMEM_BUDGET):
    m, k = lhs.shape
    k2, n = rhs.shape
    assert k == k2, (lhs.shape, rhs.shape)

    in_bytes = jnp.dtype(compute_dtype).itemsize
    out_bytes = jnp.dtype(out_dtype).itemsize

    # ---- N: lane-dense, full-width tiles up to 512 -> LHS streamed once per M tile.
    if n <= 512:
        tn = _round_up(n, 128)
        n_pad = tn
    else:
        tn = 512
        n_pad = _round_up(n, tn)

    # ---- M: bf16 packs 16 sublanes/vreg -> round small M up to 16 (unmasked loads).
    if m >= 512:
        tm = 256
    elif m >= 256:
        tm = 128
    else:
        tm = _round_up(m, 16)
    m_pad = _round_up(m, tm)
    # v7x has 2 TensorCores: a 1x1 "parallel" grid idles one -> split M into two tiles.
    if m_pad // tm == 1 and n_pad // tn == 1 and m > 16:
        tm = _round_up(-(-m // 2), 16)
        m_pad = 2 * tm

    # ---- K: deepest contraction tile that fits the per-step VMEM budget.
    k_pad = _round_up(k, 128)

    def step_bytes(tk, multi_k):
        b = (tm * tk + tk * tn) * in_bytes * 2     # double-buffered lhs + rhs
        b += tm * tn * out_bytes * 2               # double-buffered out
        b += tn * 4 * 2                            # bias row
        if multi_k:
            b += tm * tn * 4                       # f32 accumulator scratch
        return b

    units = k_pad // 128
    tk = 128
    for d in range(units, 0, -1):                  # largest divisor of k_pad first
        if units % d:
            continue
        cand = d * 128
        if step_bytes(cand, cand < k_pad) <= vmem_budget_bytes:
            tk = cand
            break
    single_k = (tk == k_pad)

    # ---- pad + cast (bf16 operands, f32 accumulation on the MXU).
    lhs_p = jnp.pad(lhs.astype(compute_dtype), ((0, m_pad - m), (0, k_pad - k)))
    rhs_p = jnp.pad(rhs.astype(compute_dtype), ((0, k_pad - k), (0, n_pad - n)))
    bias_p = jnp.pad(bias.astype(jnp.float32), (0, n_pad - n)).reshape(1, n_pad)

    common = dict(
        scale=float(scale),
        negative_slope=None if negative_slope is None else float(negative_slope),
        gain=float(gain))

    if single_k:
        kernel = functools.partial(_matmul_kernel_single_k, **common)
        grid = (m_pad // tm, n_pad // tn)
        in_specs = [
            pl.BlockSpec((tm, k_pad), lambda i, j: (i, 0)),
            pl.BlockSpec((k_pad, tn), lambda i, j: (0, j)),
            pl.BlockSpec((1, tn), lambda i, j: (0, j)),
        ]
        out_specs = pl.BlockSpec((tm, tn), lambda i, j: (i, j))
        scratch = []
        semantics = ("parallel", "parallel")
    else:
        kernel = functools.partial(_matmul_kernel_multi_k, **common)
        grid = (m_pad // tm, n_pad // tn, k_pad // tk)
        in_specs = [
            pl.BlockSpec((tm, tk), lambda i, j, kk: (i, kk)),
            pl.BlockSpec((tk, tn), lambda i, j, kk: (kk, j)),
            pl.BlockSpec((1, tn), lambda i, j, kk: (0, j)),
        ]
        out_specs = pl.BlockSpec((tm, tn), lambda i, j, kk: (i, j))
        scratch = [pltpu.VMEM((tm, tn), jnp.float32)]
        semantics = ("parallel", "parallel", "arbitrary")

    out_p = pl.pallas_call(
        kernel,
        out_shape=jax.ShapeDtypeStruct((m_pad, n_pad), out_dtype),
        grid_spec=pltpu.PrefetchScalarGridSpec(
            num_scalar_prefetch=0,
            grid=grid,
            in_specs=in_specs,
            out_specs=out_specs,
            scratch_shapes=scratch),
        compiler_params=pltpu.CompilerParams(
            dimension_semantics=semantics,
            vmem_limit_bytes=_VMEM_LIMIT_BYTES),
    )(lhs_p, rhs_p, bias_p)

    return out_p[:m, :n]


# ----------------------------------------------------------------------------
# Grouped (multi-head) EqualLinear: one pallas_call, grid over heads.
# ----------------------------------------------------------------------------
def _grouped_matmul_pallas(lhs_gmk, rhs_gkn, bias_g1n, *, scale,
                           negative_slope, gain, out_dtype):
    g, m_pad, k_pad = lhs_gmk.shape
    _, _, n_pad = rhs_gkn.shape
    kernel = functools.partial(
        _matmul_kernel_single_k, scale=float(scale),
        negative_slope=None if negative_slope is None else float(negative_slope),
        gain=float(gain))
    return pl.pallas_call(
        kernel,
        out_shape=jax.ShapeDtypeStruct((g, m_pad, n_pad), out_dtype),
        grid_spec=pltpu.PrefetchScalarGridSpec(
            num_scalar_prefetch=0,
            grid=(g,),
            in_specs=[
                pl.BlockSpec((None, m_pad, k_pad), lambda gi: (gi, 0, 0)),
                pl.BlockSpec((None, k_pad, n_pad), lambda gi: (gi, 0, 0)),
                pl.BlockSpec((None, 1, n_pad), lambda gi: (gi, 0, 0)),
            ],
            out_specs=pl.BlockSpec((None, m_pad, n_pad), lambda gi: (gi, 0, 0))),
        compiler_params=pltpu.CompilerParams(
            dimension_semantics=("parallel",),
            vmem_limit_bytes=_VMEM_LIMIT_BYTES),
    )(lhs_gmk, rhs_gkn, bias_g1n)


# ----------------------------------------------------------------------------
# Wrapper-side layout glue (im2col) + module-level ops built on the kernels.
# ----------------------------------------------------------------------------
def _im2col(x_nchw, ksize, stride, padding):
    """NCHW -> (N*OH*OW, KH*KW*Cin) patch matrix (wrapper-side layout glue)."""
    n, cin, h, w = x_nchw.shape
    x = jnp.transpose(x_nchw, (0, 2, 3, 1))                        # NHWC
    if padding:
        x = jnp.pad(x, ((0, 0), (padding, padding), (padding, padding), (0, 0)))
    hp, wp = h + 2 * padding, w + 2 * padding
    oh = (hp - ksize) // stride + 1
    ow = (wp - ksize) // stride + 1
    cols = []
    for kh in range(ksize):
        for kw in range(ksize):
            win = jax.lax.slice(
                x, (0, kh, kw, 0),
                (n, kh + (oh - 1) * stride + 1, kw + (ow - 1) * stride + 1, cin),
                strides=(1, stride, stride, 1))
            cols.append(win)
    lhs = jnp.concatenate(cols, axis=-1).reshape(n * oh * ow, ksize * ksize * cin)
    return lhs, oh, ow


def prep_conv_weight(weight_oihw, compute_dtype=jnp.bfloat16):
    """Hoistable parameter-prep: OIHW -> (KH*KW*Cin, Cout) in compute dtype."""
    cout, cin, kh, kw = weight_oihw.shape
    return jnp.transpose(weight_oihw, (2, 3, 1, 0)).reshape(
        kh * kw * cin, cout).astype(compute_dtype)


def conv2d_pallas(x_nchw, weight, bias, *, ksize=None, stride=1, padding=0,
                  weight_scale=1.0, negative_slope=None, gain=1.0,
                  out_dtype=None, compute_dtype=jnp.bfloat16):
    """conv2d(x, weight * weight_scale, bias, stride, padding) [+ fused LeakyReLU].

    `weight` is OIHW (relayout done here) or a pre-prepped (KH*KW*Cin, Cout) matrix
    from prep_conv_weight (hoist the relayout to parameter-prep time; pass ksize)."""
    n, cin, h, w = x_nchw.shape
    if weight.ndim == 4:
        cout, cin_w, kh, kw = weight.shape
        assert cin == cin_w and kh == kw
        ksize = kh
        rhs = prep_conv_weight(weight, compute_dtype)
    else:
        assert ksize is not None
        rhs = weight.astype(compute_dtype)
        assert rhs.shape[0] == ksize * ksize * cin
        cout = rhs.shape[1]
    out_dtype = x_nchw.dtype if out_dtype is None else out_dtype

    # Cast ONCE before the ksize^2 im2col inflation (halves wrapper-side HBM bytes).
    lhs, oh, ow = _im2col(x_nchw.astype(compute_dtype), ksize, stride, padding)
    if bias is None:
        bias = jnp.zeros((cout,), jnp.float32)
    out = _pallas_scaled_matmul(lhs, rhs, bias, scale=weight_scale,
                                negative_slope=negative_slope, gain=gain,
                                out_dtype=out_dtype, compute_dtype=compute_dtype)
    out = out.reshape(n, oh, ow, cout)
    return jnp.transpose(out, (0, 3, 1, 2))                        # back to NCHW


def equal_conv2d(x_nchw, weight_oihw, bias, *, stride=1, padding=0, out_dtype=None):
    """EqualConv2d.forward: conv2d(x, weight * 1/sqrt(cin*k^2), bias, stride, padding)."""
    _, cin, k, _ = weight_oihw.shape
    scale = 1.0 / math.sqrt(cin * k * k)
    return conv2d_pallas(x_nchw, weight_oihw, bias, stride=stride, padding=padding,
                         weight_scale=scale, out_dtype=out_dtype)


def equal_linear(x, weight, bias, *, lr_mul=1.0, activation=None, out_dtype=None):
    """EqualLinear.forward (activation=None or 'fused_lrelu')."""
    out_dim, in_dim = weight.shape
    scale = (1.0 / math.sqrt(in_dim)) * lr_mul
    b_eff = (bias * lr_mul) if bias is not None else jnp.zeros((out_dim,), jnp.float32)
    out_dtype = x.dtype if out_dtype is None else out_dtype
    if activation == "fused_lrelu":
        return _pallas_scaled_matmul(x, weight.T, b_eff, scale=scale,
                                     negative_slope=0.2, gain=math.sqrt(2.0),
                                     out_dtype=out_dtype)
    return _pallas_scaled_matmul(x, weight.T, b_eff, scale=scale, out_dtype=out_dtype)


def equal_linear_grouped(x_gbk, weight_gnk, bias_gn, *, lr_mul=1.0, activation=None,
                         out_dtype=None, compute_dtype=jnp.bfloat16):
    """All style-head EqualLinears in ONE pallas_call (grid over heads) instead of
    G separate tiny-M launches."""
    g, b, k = x_gbk.shape
    g2, n_out, k2 = weight_gnk.shape
    assert g == g2 and k == k2
    out_dtype = x_gbk.dtype if out_dtype is None else out_dtype
    scale = (1.0 / math.sqrt(k)) * lr_mul

    m_pad = _round_up(b, 16)
    k_pad = _round_up(k, 128)
    n_pad = _round_up(n_out, 128)

    lhs = jnp.pad(x_gbk.astype(compute_dtype),
                  ((0, 0), (0, m_pad - b), (0, k_pad - k)))
    rhs = jnp.pad(jnp.transpose(weight_gnk, (0, 2, 1)).astype(compute_dtype),
                  ((0, 0), (0, k_pad - k), (0, n_pad - n_out)))
    if bias_gn is None:
        bias_gn = jnp.zeros((g, n_out), jnp.float32)
    bias_p = jnp.pad(bias_gn.astype(jnp.float32) * lr_mul,
                     ((0, 0), (0, n_pad - n_out))).reshape(g, 1, n_pad)

    if activation == "fused_lrelu":
        negative_slope, gain = 0.2, math.sqrt(2.0)
    else:
        negative_slope, gain = None, 1.0

    out = _grouped_matmul_pallas(lhs, rhs, bias_p, scale=scale,
                                 negative_slope=negative_slope, gain=gain,
                                 out_dtype=out_dtype)
    return out[:, :b, :n_out]


# ----------------------------------------------------------------------------
# Self-test
# ----------------------------------------------------------------------------
if __name__ == "__main__":
    key = jax.random.PRNGKey(0)
    ks = jax.random.split(key, 16)
    HI = jax.lax.Precision.HIGHEST

    # ---- Test 1: EqualConv2d(4 -> 8, k=3, s=1, p=1) on (2, 4, 16, 16) -------------
    N, CIN, H, W = 2, 4, 16, 16
    COUT, KS, STRIDE, PAD = 8, 3, 1, 1
    x = jax.random.normal(ks[0], (N, CIN, H, W), jnp.float32)
    w = jax.random.normal(ks[1], (COUT, CIN, KS, KS), jnp.float32)
    b = jax.random.normal(ks[2], (COUT,), jnp.float32)

    out = jax.block_until_ready(equal_conv2d(x, w, b, stride=STRIDE, padding=PAD))

    scale = 1.0 / math.sqrt(CIN * KS * KS)
    xb = x.astype(jnp.bfloat16).astype(jnp.float32)
    wb = w.astype(jnp.bfloat16).astype(jnp.float32)
    ref1 = jax.lax.conv_general_dilated(
        xb, wb, (STRIDE, STRIDE), [(PAD, PAD), (PAD, PAD)],
        dimension_numbers=("NCHW", "OIHW", "NCHW"),
        precision=HI) * scale + b[None, :, None, None]
    assert out.shape == ref1.shape, (out.shape, ref1.shape)
    assert jnp.allclose(out, ref1, atol=1e-3, rtol=1e-3), \
        float(jnp.max(jnp.abs(out - ref1)))

    # ---- Test 2: GradualStyleBlock conv: Conv2d(k=3,s=2,p=1) + LeakyReLU(0.01) ----
    out2 = jax.block_until_ready(
        conv2d_pallas(x, w, b, stride=2, padding=1, negative_slope=0.01, gain=1.0))
    pre2 = jax.lax.conv_general_dilated(
        xb, wb, (2, 2), [(1, 1), (1, 1)],
        dimension_numbers=("NCHW", "OIHW", "NCHW"),
        precision=HI) + b[None, :, None, None]
    ref2 = jnp.where(pre2 >= 0, pre2, 0.01 * pre2)
    assert out2.shape == (N, COUT, H // 2, W // 2), out2.shape
    assert jnp.allclose(out2, ref2, atol=1e-3, rtol=1e-3), \
        float(jnp.max(jnp.abs(out2 - ref2)))

    # ---- Test 3: latlayer-style 1x1 conv, plus pre-prepped weight path ------------
    w1 = jax.random.normal(ks[3], (COUT, CIN, 1, 1), jnp.float32)
    b1 = jax.random.normal(ks[4], (COUT,), jnp.float32)
    out3 = jax.block_until_ready(conv2d_pallas(x, w1, b1, stride=1, padding=0))
    rhs1 = prep_conv_weight(w1)
    out3b = jax.block_until_ready(
        conv2d_pallas(x, rhs1, b1, ksize=1, stride=1, padding=0))
    w1b = w1.astype(jnp.bfloat16).astype(jnp.float32)
    ref3 = jax.lax.conv_general_dilated(
        xb, w1b, (1, 1), [(0, 0), (0, 0)],
        dimension_numbers=("NCHW", "OIHW", "NCHW"),
        precision=HI) + b1[None, :, None, None]
    assert jnp.allclose(out3, ref3, atol=1e-3, rtol=1e-3), \
        float(jnp.max(jnp.abs(out3 - ref3)))
    assert jnp.allclose(out3, out3b, atol=1e-6, rtol=1e-6)

    # ---- Test 4: EqualLinear(32 -> 32) with fused_leaky_relu ----------------------
    B, DIN, DOUT = 8, 32, 32
    xl = jax.random.normal(ks[5], (B, DIN), jnp.float32)
    wl = jax.random.normal(ks[6], (DOUT, DIN), jnp.float32)
    bl = jax.random.normal(ks[7], (DOUT,), jnp.float32)
    out4 = jax.block_until_ready(
        equal_linear(xl, wl, bl, lr_mul=1.0, activation="fused_lrelu"))
    sl = 1.0 / math.sqrt(DIN)
    xlb = xl.astype(jnp.bfloat16).astype(jnp.float32)
    wlb = wl.astype(jnp.bfloat16).astype(jnp.float32)
    pre4 = jnp.dot(xlb, wlb.T, precision=HI) * sl + bl[None, :]
    ref4 = jnp.where(pre4 >= 0, pre4, 0.2 * pre4) * math.sqrt(2.0)
    assert jnp.allclose(out4, ref4, atol=1e-3, rtol=1e-3), \
        float(jnp.max(jnp.abs(out4 - ref4)))

    # ---- Test 5: grouped style-head EqualLinear (3 heads in one launch) -----------
    G, BG, DG = 3, 4, 32
    xg = jax.random.normal(ks[8], (G, BG, DG), jnp.float32)
    wg = jax.random.normal(ks[9], (G, DG, DG), jnp.float32)
    bg = jax.random.normal(ks[10], (G, DG), jnp.float32)
    out5 = jax.block_until_ready(equal_linear_grouped(xg, wg, bg, lr_mul=1.0))
    sg = 1.0 / math.sqrt(DG)
    xgb = xg.astype(jnp.bfloat16).astype(jnp.float32)
    wgb = wg.astype(jnp.bfloat16).astype(jnp.float32)
    ref5 = jnp.stack([jnp.dot(xgb[g], wgb[g].T, precision=HI) * sg + bg[g][None, :]
                      for g in range(G)])
    assert out5.shape == (G, BG, DG), out5.shape
    assert jnp.allclose(out5, ref5, atol=1e-3, rtol=1e-3), \
        float(jnp.max(jnp.abs(out5 - ref5)))

    # ---- Test 6: multi-K accumulation path (tiny VMEM budget forces K tiling) -----
    M6, K6, N6 = 64, 512, 256
    a6 = jax.random.normal(ks[11], (M6, K6), jnp.float32)
    r6 = jax.random.normal(ks[12], (K6, N6), jnp.float32)
    b6 = jax.random.normal(ks[13], (N6,), jnp.float32)
    out6 = jax.block_until_ready(
        _pallas_scaled_matmul(a6, r6, b6, scale=0.5,
                              vmem_budget_bytes=192 * 1024))
    a6b = a6.astype(jnp.bfloat16).astype(jnp.float32)
    r6b = r6.astype(jnp.bfloat16).astype(jnp.float32)
    ref6 = jnp.dot(a6b, r6b, precision=HI) * 0.5 + b6[None, :]
    assert jnp.allclose(out6, ref6, atol=2e-2, rtol=2e-2), \
        float(jnp.max(jnp.abs(out6 - ref6)))

    print("KERNEL_OK")
</pallas_src>

<mosaic_0001>
module attributes {stable_mosaic.version = 11 : i64} {
  func.func @_matmul_kernel_single_k(%arg0: i32, %arg1: i32, %arg2: memref<256x128xbf16, #tpu.memory_space<vmem>>, %arg3: memref<128x128xbf16, #tpu.memory_space<vmem>>, %arg4: memref<1x128xf32, #tpu.memory_space<vmem>>, %arg5: memref<256x128xf32, #tpu.memory_space<vmem>>) attributes {dimension_semantics = [#tpu.dimension_semantics<parallel>, #tpu.dimension_semantics<parallel>], iteration_bounds = array<i64: 2, 1>, scalar_prefetch = 0 : i64, scratch_operands = 0 : i64, tpu.core_type = #tpu.core_type<tc>, window_params = [{transform_indices = @transform_0, window_bounds = array<i64: 256, 128>}, {transform_indices = @transform_1, window_bounds = array<i64: 128, 128>}, {transform_indices = @transform_2, window_bounds = array<i64: 1, 128>}, {transform_indices = @transform_3, window_bounds = array<i64: 256, 128>}]} {
    %c0 = arith.constant 0 : index
    %c0_0 = arith.constant 0 : index
    %0 = vector.load %arg2[%c0, %c0_0] : memref<256x128xbf16, #tpu.memory_space<vmem>>, vector<256x128xbf16>
    %c0_1 = arith.constant 0 : index
    %c0_2 = arith.constant 0 : index
    %1 = vector.load %arg3[%c0_1, %c0_2] : memref<128x128xbf16, #tpu.memory_space<vmem>>, vector<128x128xbf16>
    %cst = arith.constant dense<0.000000e+00> : vector<256x128xf32>
    %2 = tpu.matmul %0, %1, %cst {dimension_numbers = #tpu.dot_dimension_numbers<[1], [0], [0], [1], [0, 0, 1, 1], [], []>} : vector<256x128xbf16>, vector<128x128xbf16>, vector<256x128xf32> -> vector<256x128xf32>
    %c0_3 = arith.constant 0 : index
    %c0_4 = arith.constant 0 : index
    %3 = vector.load %arg4[%c0_3, %c0_4] : memref<1x128xf32, #tpu.memory_space<vmem>>, vector<1x128xf32>
    %cst_5 = arith.constant 0.166666672 : f32
    %4 = vector.broadcast %cst_5 : f32 to vector<256x128xf32>
    %5 = arith.mulf %2, %4 : vector<256x128xf32>
    %6 = vector.broadcast %3 : vector<1x128xf32> to vector<256x128xf32>
    %7 = arith.addf %5, %6 : vector<256x128xf32>
    %c0_6 = arith.constant 0 : index
    %c0_7 = arith.constant 0 : index
    %8 = vector.load %arg5[%c0_6, %c0_7] : memref<256x128xf32, #tpu.memory_space<vmem>>, vector<256x128xf32>
    tpu.vector_store %arg5[%c0_6, %c0_7], %7 {strides = array<i32>} : memref<256x128xf32, #tpu.memory_space<vmem>>, vector<256x128xf32>,
    return
  }
  func.func @transform_0(%arg0: i32, %arg1: i32) -> (i32, i32) {
    %c0_i32 = arith.constant 0 : i32
    %c0_i32_0 = arith.constant 0 : i32
    return %arg0, %c0_i32 : i32, i32
  }
  func.func @transform_1(%arg0: i32, %arg1: i32) -> (i32, i32) {
    %c0_i32 = arith.constant 0 : i32
    %c0_i32_0 = arith.constant 0 : i32
    return %c0_i32, %arg1 : i32, i32
  }
  func.func @transform_2(%arg0: i32, %arg1: i32) -> (i32, i32) {
    %c0_i32 = arith.constant 0 : i32
    %c0_i32_0 = arith.constant 0 : i32
    return %c0_i32, %arg1 : i32, i32
  }
  func.func @transform_3(%arg0: i32, %arg1: i32) -> (i32, i32) {
    %c0_i32 = arith.constant 0 : i32
    return %arg0, %arg1 : i32, i32
  }
}

</mosaic_0001>

<bundles_post_ra>
// kernel: tpu_custom_call.1
= control target key start
LH: loop header
LB: loop body
LE: loop exit
PB: predicated region body
PF: predicated region fallthrough
CT: control target
= control target key end

     0   :  { %s1411_s0 = inlined_call_operand.hbm [shape: bf16[512,128], index: 0, kind: input, shape index: {}]   ;;  %s1412_s1 = inlined_call_operand.hbm [shape: bf16[128,128], index: 1, kind: input, shape index: {}]   ;;  %s1413_s2 = inlined_call_operand.vmem [shape: f32[1,128], index: 2, kind: input, shape index: {}]   ;;  %s1414_s3 = inlined_call_operand.hbm [shape: f32[512,128], index: 3, kind: output, shape index: {}]  }
   0x1   :  { %1416 = sst [smem:[#allocation11_spill]] %s1412_s1 }
   0x2   :  { %8 = vsyncpa [#allocation3], 0 }
   0x3   :  { %10 = vsyncpa [#allocation3 + $0x1], 0 }
   0x4   :  { %11 = vsyncpa [#allocation6], 0 }
   0x5   :  { %12 = vsyncpa [#allocation4], 0 }
   0x6   :  { %14 = vsyncpa [#allocation4 + $0x1], 0  ;;  %s1165_s12 = smov 0   ;;  %s1167_s13 = smov 0  }
   0x7   :  { %s1169_s14 = smov 0   ;;  %s1171_s15 = smov 0  }
   0x8   :  { %s1173_s16 = smov 0   ;;  %s1175_s17 = smov 0  }
   0x9 LB: > { %s750_s18 = sadd.s32 4294967295, %s1138_s17   ;;  %s751_s19 = sadd.s32 4294967294, %s1138_s17   ;;  %s1138_s17 = sphi %s1175_s17, %s20_s17   ;;  %s1134_s16 = sphi %s1173_s16, %s1430_s16   ;;  %s1130_s15 = sphi %s1171_s15, %s1429_s15   ;;  %s1126_s14 = sphi %s1169_s14, %s1428_s14   ;;  %s1122_s13 = sphi %s1167_s13, %s1427_s13   ;;  %s1118_s12 = sphi %s1165_s12, %s1426_s12  }
   0xa   : > { %p52_p0 = scmp.ne.s32.totalorder %s1122_s13, %s1118_s12  ;;  %p1199_p1 = scmp.eq.s32.totalorder %s750_s18, 0 }
   0xb   : > { %p1203_p2 = scmp.eq.s32.totalorder %s750_s18, 1  ;;  %p136_p3 = scmp.eq.s32.totalorder %s751_s19, 1 }
   0xc   : > { %p1209_p4 = por %p1199_p1, %p52_p0  ;;  %p752_p5 = scmp.ge.s32.totalorder %s1138_s17, 1 }
   0xd   : > { %p1214_p6 = por %p136_p3, %p52_p0  ;;  %p143_p7 = scmp.lt.s32.totalorder %s1138_s17, 3 }
   0xe   : > { %s1421_s1 = sld [smem:[#allocation11_spill]]  ;;  %s1140_s28 = smov [#allocation5]  }
   0xf   : > { %p1222_p8 = pnand %p752_p5, %p143_p7  ;;  %s158_s29 = sshll.u32 %s1140_s28, 4  ;;  %s159_s29 = int_to_ptr.vmem [resolvable:$true] %s158_s29 }
  0x10   : > { %p755_p11 = scmp.ge.s32.totalorder %s1138_s17, 2  ;;  %s1415_s30 = smov 64  }
  0x11   : > { %p922_p9 = pneg %p1222_p8  ;;  %s1142_s4 = smov 4  }
  0x12   : > { %s32_s5 = sadd.s32 1, %s1134_s16  ;;  %s39_s6 = sadd.s32 1, %s1126_s14 }
  0x13   : > { %p923_p10 = pnand %p922_p9, %p1199_p1  ;;  %p34_p12 = scmp.ge.s32.totalorder %s32_s5, 2 }
  0x14   : > { %s156_s26 = sshll.u32 %s1421_s1, 4  ;;  %p46_p13 = scmp.ne.s32.totalorder %s1126_s14, %s1122_s13  ;;  %s157_s26 = int_to_ptr.hbm [resolvable:$true] %s156_s26 }
  0x15   : > { %925 = dma.hbm_to_vmem [thread:$0]  (!%p923_p10), %s157_s26, 1024, %s159_s29, [#allocation6], %s1415_s30, %s1415_s30, %s1142_s4  }
  0x16   : > { %p47_p0 = scmp.eq.s32.totalorder %s1138_s17, 0  ;;  %s1432_s5 = smov (%p34_p12, %s32_s5), 0 }
  0x17   : > { %p1247_p5 = por %p1203_p2, %p46_p13  ;;  %s36_s9 = ssub.s32 %s1134_s16, %s1432_s5 }
  0x18   : > { %p1241_p3 = por %p47_p0, %p46_p13  ;;  %p935_p7 = scmp.lt.s32.totalorder %s1138_s17, 2 }
  0x19   : > { %p37_p9 = scmp.eq.s32.totalorder %s36_s9, 0  ;;  %s178_s10 = sand.u32 1, %s1126_s14  }
  0x1a   : > { %s756_s11 = sshll.u32 %s178_s10, 7  ;;  %s864_s19 = sshll.u32 %s1134_s16, 7 }
  0x1b   : > { %s1256_s18 = scalar_select %p37_p9, %s1126_s14, %s39_s6  }
  0x1c   : > { %s187_s26 = scalar_lea.hbm %s1411_s0, %s864_s19  ;;  %s182_s28 = scalar_lea.vmem [#allocation2], %s756_s11 }
  0x1d   : > { %s190_s29 = sshll.u32 %s182_s28, 4  ;;  %s188_s21 = sshll.u32 %s187_s26, 4  ;;  %s191_s29 = int_to_ptr.vmem [resolvable:$true] %s190_s29  ;;  %s189_s21 = int_to_ptr.hbm [resolvable:$true] %s188_s21 }
  0x1e   : > { %p927_p2 = pnand %p935_p7, %p1241_p3  ;;  %s179_s30 = scalar_lea.sflag [#allocation3], %s178_s10 }
  0x1f   : > { %s1425_s1 = smov 64   ;;  %202 = sbr.rel (%p1222_p8) target bundleno = 269 (0x10d), region = 32 }
  0x20   : > { %929 = dma.hbm_to_vmem [thread:$0]  (!%p927_p2), %s189_s21, 2048, %s191_s29, %s179_s30, %s1425_s1, %s1425_s1, %s1142_s4  }
  0x21   : > { %s1270_s6 = sand.u32 (!%p1222_p8), 1, %s1122_s13  }
  0x22   : > { %s760_s9 = sshll.u32 (!%p1222_p8), %s1270_s6, 7  ;;  %s205_s11 = scalar_lea.sflag (!%p1222_p8), [#allocation3], %s1270_s6 }
  0x23   : > { %s1274_s19 = scalar_lea.vmem (!%p1222_p8), [#allocation2], %s760_s9 }
  0x24   : > { %1105 = dma.done.wait (%p1209_p4), %s205_s11, 2048  }
  0x25   : > { %1107 = vsyncadd (%p1209_p4), %s205_s11, 4294965248 }
  0x26   : > { %1109 = dma.done.wait (%p1199_p1), [#allocation6], 1024  }
  0x27   : > { %1111 = vsyncadd (%p1199_p1), [#allocation6], 4294966272  ;;  %v888_v0 = vld [vmem:[#allocation5 + $0x38] sm:$0xff]  ;;  %v887_v1 = vld [vmem:[#allocation5 + $0x30] sm:$0xff]  ;;  %s762_s1 = sshll.u32 %s1270_s6, 8  ;;  %s889_s30 = sshll.u32 %s1130_s15, 8 }
  0x28   : > { %437 = vmatpush.bf16.msra.mxu0 %v888_v0  ;;  %890 = vmatpush.bf16.msra.mxu1 %v888_v0  ;;  %v886_v2 = vld [vmem:[#allocation5 + $0x28] sm:$0xff]  ;;  %v885_v3 = vld [vmem:[#allocation5 + $0x20] sm:$0xff]  ;;  %v884_v4 = vld [vmem:[#allocation5 + $0x18] sm:$0xff]  ;;  %s1308_s27 = scalar_lea.vmem [#allocation7], %s762_s1  ;;  %s639_s10 = scalar_lea.hbm %s1414_s3, %s889_s30 }
  0x29   : > { %891 = vmatpush.bf16.msra.mxu2 %v888_v0  ;;  %892 = vmatpush.bf16.msra.mxu3 %v888_v0  ;;  %v883_v5 = vld [vmem:[#allocation5 + $0x10] sm:$0xff]  ;;  %v882_v6 = vld [vmem:[#allocation5 + $0x8] sm:$0xff]  ;;  %v881_v7 = vld [vmem:[#allocation5] sm:$0xff]  ;;  %s640_s15 = sshll.u32 %s1308_s27, 4  ;;  %s642_s24 = sshll.u32 %s639_s10, 4  ;;  %s641_s15 = int_to_ptr.vmem [resolvable:$true] %s640_s15  ;;  %s643_s24 = int_to_ptr.hbm [resolvable:$true] %s642_s24 }
  0x2a   : > { %v865_v8 = vld [vmem:[%s1274_s19] sm:$0xff]  ;;  %v866_v12 = vld [vmem:[%s1274_s19 + $0x8] sm:$0xff]  ;;  %v867_v16 = vld [vmem:[%s1274_s19 + $0x10] sm:$0xff]  ;;  %s627_s25 = scalar_lea.sflag [#allocation4], %s1270_s6  ;;  %s1066_s26 = sshra.s32 %s643_s24, 4  ;;  %s1067_s26 = int_to_ptr.hbm [resolvable:$true] %s1066_s26 }
  0x2b   : > { %v869_v9 = vld [vmem:[%s1274_s19 + $0x20] sm:$0xff]  ;;  %v870_v13 = vld [vmem:[%s1274_s19 + $0x28] sm:$0xff]  ;;  %v871_v17 = vld [vmem:[%s1274_s19 + $0x30] sm:$0xff]  ;;  %s1068_s28 = scalar_lea.hbm %s1067_s26, 256  ;;  %s1072_s9 = scalar_lea.hbm %s1414_s3, 512 }
  0x2c   : > { %438 = vmatpush.bf16.msra.mxu0 %v887_v1  ;;  %893 = vmatpush.bf16.msra.mxu1 %v887_v1  ;;  %v873_v10 = vld [vmem:[%s1274_s19 + $0x40] sm:$0xff]  ;;  %v874_v14 = vld [vmem:[%s1274_s19 + $0x48] sm:$0xff]  ;;  %v875_v18 = vld [vmem:[%s1274_s19 + $0x50] sm:$0xff]  ;;  %p1069_p1 = scmp.ne.s32.totalorder %s1067_s26, %s1068_s28  ;;  %p1073_p10 = scmp.lt.s32.totalorder %s1067_s26, %s1414_s3 }
  0x2d   : > { %894 = vmatpush.bf16.msra.mxu2 %v887_v1  ;;  %895 = vmatpush.bf16.msra.mxu3 %v887_v1  ;;  %v877_v11 = vld [vmem:[%s1274_s19 + $0x60] sm:$0xff]  ;;  %v878_v15 = vld [vmem:[%s1274_s19 + $0x68] sm:$0xff]  ;;  %v879_v19 = vld [vmem:[%s1274_s19 + $0x70] sm:$0xff]  ;;  %p1074_p12 = scmp.lt.s32.totalorder %s1072_s9, %s1068_s28 }
  0x2e   : > { %v868_v20 = vld [vmem:[%s1274_s19 + $0x18] sm:$0xff]  ;;  %v1304_v24 = vld [vmem:[%s1413_s2] ss:$0 sm:$0xff]  ;;  %p1070_p4 = pnand %p1069_p1, %p1247_p5 }
  0x2f   : > { %v872_v21 = vld [vmem:[%s1274_s19 + $0x38] sm:$0xff]  ;;  %p1075_p13 = por %p1074_p12, %p1073_p10 }
  0x30   : > { %439 = vmatpush.bf16.msra.mxu0 %v886_v2  ;;  %896 = vmatpush.bf16.msra.mxu1 %v886_v2  ;;  %v876_v22 = vld [vmem:[%s1274_s19 + $0x58] sm:$0xff]  ;;  %p1071_p8 = pneg %p1070_p4 }
  0x31   : > { %897 = vmatpush.bf16.msra.mxu2 %v886_v2  ;;  %898 = vmatpush.bf16.msra.mxu3 %v886_v2  ;;  %v880_v23 = vld [vmem:[%s1274_s19 + $0x78] sm:$0xff] }
  0x32   : > { %p1076_p0 = pnand %p1075_p13, %p1071_p8 }
  0x34   : > { %440 = vmatpush.bf16.msra.mxu0 %v885_v3  ;;  %899 = vmatpush.bf16.msra.mxu1 %v885_v3 }
  0x35   : > { %900 = vmatpush.bf16.msra.mxu2 %v885_v3  ;;  %901 = vmatpush.bf16.msra.mxu3 %v885_v3 }
  0x38   : > { %441 = vmatpush.bf16.msra.mxu0 %v884_v4  ;;  %902 = vmatpush.bf16.msra.mxu1 %v884_v4 }
  0x39   : > { %903 = vmatpush.bf16.msra.mxu2 %v884_v4  ;;  %904 = vmatpush.bf16.msra.mxu3 %v884_v4 }
  0x3c   : > { %442 = vmatpush.bf16.msra.mxu0 %v883_v5  ;;  %905 = vmatpush.bf16.msra.mxu1 %v883_v5 }
  0x3d   : > { %906 = vmatpush.bf16.msra.mxu2 %v883_v5  ;;  %907 = vmatpush.bf16.msra.mxu3 %v883_v5 }
  0x40   : > { %443 = vmatpush.bf16.msra.mxu0 %v882_v6  ;;  %908 = vmatpush.bf16.msra.mxu1 %v882_v6 }
  0x41   : > { %909 = vmatpush.bf16.msra.mxu2 %v882_v6  ;;  %910 = vmatpush.bf16.msra.mxu3 %v882_v6 }
  0x44   : > { %444 = vmatpush.bf16.msra.mxu0 %v881_v7  ;;  %911 = vmatpush.bf16.msra.mxu1 %v881_v7 }
  0x45   : > { %912 = vmatpush.bf16.msra.mxu2 %v881_v7  ;;  %913 = vmatpush.bf16.msra.mxu3 %v881_v7 }
  0x47   : > { %445 = vmatmul.bf16.vlgmr.msra.gmra.mxu0 %v865_v8  ;;  %465 = vmatmul.bf16.vlgmr.msra.gmra.mxu1 %v869_v9 }
  0x48   : > { %485 = vmatmul.bf16.vlgmr.msra.gmra.mxu2 %v873_v10  ;;  %505 = vmatmul.bf16.vlgmr.msra.gmra.mxu3 %v877_v11 }
  0x57   : > { %450 = vmatmul.bf16.gmra.mxu0 %v866_v12  ;;  %470 = vmatmul.bf16.gmra.mxu1 %v870_v13 }
  0x58   : > { %490 = vmatmul.bf16.gmra.mxu2 %v874_v14  ;;  %510 = vmatmul.bf16.gmra.mxu3 %v878_v15 }
  0x67   : > { %455 = vmatmul.bf16.gmra.mxu0 %v867_v16  ;;  %475 = vmatmul.bf16.gmra.mxu1 %v871_v17 }
  0x68   : > { %495 = vmatmul.bf16.gmra.mxu2 %v875_v18  ;;  %515 = vmatmul.bf16.gmra.mxu3 %v879_v19 }
  0x77   : > { %460 = vmatmul.bf16.gmra.mxu0 %v868_v20  ;;  %480 = vmatmul.bf16.gmra.mxu1 %v872_v21 }
  0x78   : > { %500 = vmatmul.bf16.gmra.mxu2 %v876_v22  ;;  %520 = vmatmul.bf16.gmra.mxu3 %v880_v23 }
  0xc4   : > { %v446_v25 = vpop.f32.mrf.mxu0  ;;  %v466_v26 = vpop.f32.mrf.mxu1 }
  0xc5   : > { %v527_v27 = vmul.f32 0.16666667, %v446_v25  ;;  %v535_v28 = vmul.f32 0.16666667, %v466_v26 }
  0xc7   : > { %v562_v29 = vadd.f32 %v1304_v24, %v527_v27  ;;  %v570_v30 = vadd.f32 %v1304_v24, %v535_v28 }
  0xc9   : > { %594 = vst [vmem:[%s1308_s27] sm:$0xff] %v562_v29 }
  0xca   : > { %602 = vst [vmem:[%s1308_s27 + $0x40] sm:$0xff] %v570_v30 }
  0xcb   : > { %v486_v31 = vpop.f32.mrf.mxu2  ;;  %v506_v32 = vpop.f32.mrf.mxu3 }
  0xcc   : > { %v543_v33 = vmul.f32 0.16666667, %v486_v31  ;;  %v551_v34 = vmul.f32 0.16666667, %v506_v32  ;;  %v448_v35 = vpop.f32.mrf.mxu0  ;;  %v468_v36 = vpop.f32.mrf.mxu1 }
  0xcd   : > { %v528_v37 = vmul.f32 0.16666667, %v448_v35  ;;  %v536_v38 = vmul.f32 0.16666667, %v468_v36 }
  0xce   : > { %v578_v39 = vadd.f32 %v1304_v24, %v543_v33  ;;  %v586_v40 = vadd.f32 %v1304_v24, %v551_v34 }
  0xcf   : > { %v563_v41 = vadd.f32 %v1304_v24, %v528_v37  ;;  %v571_v42 = vadd.f32 %v1304_v24, %v536_v38 }
  0xd0   : > { %610 = vst [vmem:[%s1308_s27 + $0x80] sm:$0xff] %v578_v39 }
  0xd1   : > { %618 = vst [vmem:[%s1308_s27 + $0xc0] sm:$0xff] %v586_v40 }
  0xd2   : > { %595 = vst [vmem:[%s1308_s27 + $0x8] sm:$0xff] %v563_v41 }
  0xd3   : > { %603 = vst [vmem:[%s1308_s27 + $0x48] sm:$0xff] %v571_v42  ;;  %v488_v43 = vpop.f32.mrf.mxu2  ;;  %v508_v44 = vpop.f32.mrf.mxu3 }
  0xd4   : > { %v544_v45 = vmul.f32 0.16666667, %v488_v43  ;;  %v552_v46 = vmul.f32 0.16666667, %v508_v44  ;;  %v451_v47 = vpop.f32.mrf.mxu0  ;;  %v471_v48 = vpop.f32.mrf.mxu1 }
  0xd5   : > { %v529_v49 = vmul.f32 0.16666667, %v451_v47  ;;  %v537_v50 = vmul.f32 0.16666667, %v471_v48 }
  0xd6   : > { %v579_v51 = vadd.f32 %v1304_v24, %v544_v45  ;;  %v587_v52 = vadd.f32 %v1304_v24, %v552_v46 }
  0xd7   : > { %v564_v53 = vadd.f32 %v1304_v24, %v529_v49  ;;  %v572_v54 = vadd.f32 %v1304_v24, %v537_v50 }
  0xd8   : > { %611 = vst [vmem:[%s1308_s27 + $0x88] sm:$0xff] %v579_v51 }
  0xd9   : > { %619 = vst [vmem:[%s1308_s27 + $0xc8] sm:$0xff] %v587_v52 }
  0xda   : > { %596 = vst [vmem:[%s1308_s27 + $0x10] sm:$0xff] %v564_v53 }
  0xdb   : > { %604 = vst [vmem:[%s1308_s27 + $0x50] sm:$0xff] %v572_v54  ;;  %v491_v55 = vpop.f32.mrf.mxu2  ;;  %v511_v56 = vpop.f32.mrf.mxu3 }
  0xdc   : > { %v545_v57 = vmul.f32 0.16666667, %v491_v55  ;;  %v553_v58 = vmul.f32 0.16666667, %v511_v56  ;;  %v453_v59 = vpop.f32.mrf.mxu0  ;;  %v473_v60 = vpop.f32.mrf.mxu1 }
  0xdd   : > { %v530_v61 = vmul.f32 0.16666667, %v453_v59  ;;  %v538_v62 = vmul.f32 0.16666667, %v473_v60 }
  0xde   : > { %v580_v63 = vadd.f32 %v1304_v24, %v545_v57  ;;  %v588_v0 = vadd.f32 %v1304_v24, %v553_v58 }
  0xdf   : > { %v565_v1 = vadd.f32 %v1304_v24, %v530_v61  ;;  %v573_v2 = vadd.f32 %v1304_v24, %v538_v62 }
  0xe0   : > { %612 = vst [vmem:[%s1308_s27 + $0x90] sm:$0xff] %v580_v63 }
  0xe1   : > { %620 = vst [vmem:[%s1308_s27 + $0xd0] sm:$0xff] %v588_v0 }
  0xe2   : > { %597 = vst [vmem:[%s1308_s27 + $0x18] sm:$0xff] %v565_v1 }
  0xe3   : > { %605 = vst [vmem:[%s1308_s27 + $0x58] sm:$0xff] %v573_v2  ;;  %v493_v3 = vpop.f32.mrf.mxu2  ;;  %v513_v4 = vpop.f32.mrf.mxu3 }
  0xe4   : > { %v546_v5 = vmul.f32 0.16666667, %v493_v3  ;;  %v554_v6 = vmul.f32 0.16666667, %v513_v4  ;;  %v456_v7 = vpop.f32.mrf.mxu0  ;;  %v476_v8 = vpop.f32.mrf.mxu1 }
  0xe5   : > { %v531_v9 = vmul.f32 0.16666667, %v456_v7  ;;  %v539_v10 = vmul.f32 0.16666667, %v476_v8 }
  0xe6   : > { %v581_v11 = vadd.f32 %v1304_v24, %v546_v5  ;;  %v589_v12 = vadd.f32 %v1304_v24, %v554_v6 }
  0xe7   : > { %v566_v13 = vadd.f32 %v1304_v24, %v531_v9  ;;  %v574_v14 = vadd.f32 %v1304_v24, %v539_v10 }
  0xe8   : > { %613 = vst [vmem:[%s1308_s27 + $0x98] sm:$0xff] %v581_v11 }
  0xe9   : > { %621 = vst [vmem:[%s1308_s27 + $0xd8] sm:$0xff] %v589_v12 }
  0xea   : > { %598 = vst [vmem:[%s1308_s27 + $0x20] sm:$0xff] %v566_v13 }
  0xeb   : > { %606 = vst [vmem:[%s1308_s27 + $0x60] sm:$0xff] %v574_v14  ;;  %v496_v15 = vpop.f32.mrf.mxu2  ;;  %v516_v16 = vpop.f32.mrf.mxu3 }
  0xec   : > { %v547_v17 = vmul.f32 0.16666667, %v496_v15  ;;  %v555_v18 = vmul.f32 0.16666667, %v516_v16  ;;  %v458_v19 = vpop.f32.mrf.mxu0  ;;  %v478_v20 = vpop.f32.mrf.mxu1 }
  0xed   : > { %v532_v21 = vmul.f32 0.16666667, %v458_v19  ;;  %v540_v22 = vmul.f32 0.16666667, %v478_v20 }
  0xee   : > { %v582_v23 = vadd.f32 %v1304_v24, %v547_v17  ;;  %v590_v25 = vadd.f32 %v1304_v24, %v555_v18 }
  0xef   : > { %v567_v26 = vadd.f32 %v1304_v24, %v532_v21  ;;  %v575_v27 = vadd.f32 %v1304_v24, %v540_v22 }
  0xf0   : > { %614 = vst [vmem:[%s1308_s27 + $0xa0] sm:$0xff] %v582_v23 }
  0xf1   : > { %622 = vst [vmem:[%s1308_s27 + $0xe0] sm:$0xff] %v590_v25 }
  0xf2   : > { %599 = vst [vmem:[%s1308_s27 + $0x28] sm:$0xff] %v567_v26 }
  0xf3   : > { %607 = vst [vmem:[%s1308_s27 + $0x68] sm:$0xff] %v575_v27  ;;  %v498_v28 = vpop.f32.mrf.mxu2  ;;  %v518_v29 = vpop.f32.mrf.mxu3 }
  0xf4   : > { %v548_v30 = vmul.f32 0.16666667, %v498_v28  ;;  %v556_v31 = vmul.f32 0.16666667, %v518_v29  ;;  %v461_v32 = vpop.f32.mrf.mxu0  ;;  %v481_v33 = vpop.f32.mrf.mxu1 }
  0xf5   : > { %v533_v34 = vmul.f32 0.16666667, %v461_v32  ;;  %v541_v35 = vmul.f32 0.16666667, %v481_v33 }
  0xf6   : > { %v583_v36 = vadd.f32 %v1304_v24, %v548_v30  ;;  %v591_v37 = vadd.f32 %v1304_v24, %v556_v31 }
  0xf7   : > { %v568_v38 = vadd.f32 %v1304_v24, %v533_v34  ;;  %v576_v39 = vadd.f32 %v1304_v24, %v541_v35 }
  0xf8   : > { %615 = vst [vmem:[%s1308_s27 + $0xa8] sm:$0xff] %v583_v36 }
  0xf9   : > { %623 = vst [vmem:[%s1308_s27 + $0xe8] sm:$0xff] %v591_v37 }
  0xfa   : > { %600 = vst [vmem:[%s1308_s27 + $0x30] sm:$0xff] %v568_v38 }
  0xfb   : > { %608 = vst [vmem:[%s1308_s27 + $0x70] sm:$0xff] %v576_v39  ;;  %v501_v40 = vpop.f32.mrf.mxu2  ;;  %v521_v41 = vpop.f32.mrf.mxu3 }
  0xfc   : > { %v549_v42 = vmul.f32 0.16666667, %v501_v40  ;;  %v557_v43 = vmul.f32 0.16666667, %v521_v41  ;;  %v463_v44 = vpop.f32.mrf.mxu0  ;;  %v483_v45 = vpop.f32.mrf.mxu1 }
  0xfd   : > { %v534_v46 = vmul.f32 0.16666667, %v463_v44  ;;  %v542_v47 = vmul.f32 0.16666667, %v483_v45 }
  0xfe   : > { %v584_v48 = vadd.f32 %v1304_v24, %v549_v42  ;;  %v592_v49 = vadd.f32 %v1304_v24, %v557_v43 }
  0xff   : > { %v569_v50 = vadd.f32 %v1304_v24, %v534_v46  ;;  %v577_v51 = vadd.f32 %v1304_v24, %v542_v47 }
 0x100   : > { %616 = vst [vmem:[%s1308_s27 + $0xb0] sm:$0xff] %v584_v48 }
 0x101   : > { %624 = vst [vmem:[%s1308_s27 + $0xf0] sm:$0xff] %v592_v49 }
 0x102   : > { %601 = vst [vmem:[%s1308_s27 + $0x38] sm:$0xff] %v569_v50 }
 0x103   : > { %609 = vst [vmem:[%s1308_s27 + $0x78] sm:$0xff] %v577_v51  ;;  %v503_v52 = vpop.f32.mrf.mxu2  ;;  %v523_v53 = vpop.f32.mrf.mxu3 }
 0x104   : > { %v550_v54 = vmul.f32 0.16666667, %v503_v52  ;;  %v558_v55 = vmul.f32 0.16666667, %v523_v53 }
 0x106   : > { %v585_v56 = vadd.f32 %v1304_v24, %v550_v54  ;;  %v593_v57 = vadd.f32 %v1304_v24, %v558_v55 }
 0x108   : > { %617 = vst [vmem:[%s1308_s27 + $0xb8] sm:$0xff] %v585_v56 }
 0x109   : > { %625 = vst [vmem:[%s1308_s27 + $0xf8] sm:$0xff] %v593_v57 }
 0x10a   : > { %1079 = shalt.err (!%p1076_p0)
}
 0x10b   : > { %s1143_s6 = smov 128   ;;  %s1144_s1 = smov 8  }
 0x10c   : > { %920 = dma.vmem_to_hbm [thread:$0]  (%p1247_p5), %s641_s15, 4096, %s643_s24, %s627_s25, %s1143_s6, %s1143_s6, %s1144_s1  }
 0x10d PF: > { %s657_s20 = sand.u32 1, %s1118_s12   ;;  %p931_p3 = pnand %p755_p11, %p1214_p6 }
 0x10e   : > { %s658_s22 = scalar_lea.sflag [#allocation4], %s657_s20 }
 0x10f   : > { %p932_p7 = pneg %p931_p3 }
 0x111   : > { %1113 = dma.done.wait (%p932_p7), %s658_s22, 4096  }
 0x112   : > { %1115 = vsyncadd (%p932_p7), %s658_s22, 4294963200  ;;  %s20_s17 = sadd.s32 1, %s1138_s17   ;;  %s1426_s12 = smov %s1122_s13 }
 0x113   : > { %p17_p9 = scmp.ge.s32.totalorder %s20_s17, 4   ;;  %s1427_s13 = smov %s1126_s14 }
 0x114   : > { %s1428_s14 = smov %s1256_s18  ;;  %s1429_s15 = smov %s1134_s16 }
 0x115   : > { %s1430_s16 = smov %s1432_s5  ;;  %19 = sbr.rel (!%p17_p9) target bundleno = 9 (0x9), region = 85 }
 0x11a   :  { %664 = vsyncpa [#allocation3], 1 }
 0x11b   :  { %666 = vsyncpa [#allocation3 + $0x1], 1 }
 0x11c   :  { %667 = vsyncpa [#allocation6], 1 }
 0x11d   :  { %668 = vsyncpa [#allocation4], 1 }
 0x11e   :  { %670 = vsyncpa [#allocation4 + $0x1], 1 }

</bundles_post_ra>
